<compile_context>
chip_gen: v6e
topology: v6e:2x2x1
jax: 0.10.0
libtpu: 0.0.40
codegen_flags: <defaults>
</compile_context>

<pallas_src>
import functools

import jax
import jax.numpy as jnp
from jax.experimental import pallas as pl
from jax.experimental.pallas import tpu as pltpu


# ----------------------------------------------------------------------------
# Fused kernel: 3x (matmul+bias) + ReLU + residual + LayerNorm
# ----------------------------------------------------------------------------
def _smt_kernel(eps,
                s_ref, w1_ref, b1_ref, w2_ref, b2_ref, w3_ref, b3_ref,
                gamma_ref, beta_ref, o_ref):
    # s_ref: [TM, C] (native dtype).  w*: [C, C] bf16.  b*/gamma/beta: [1, C] f32.

    # linear_1 + ReLU   (bf16 MXU operands, f32 accumulate)
    h = jnp.dot(s_ref[...].astype(jnp.bfloat16), w1_ref[...],
                preferred_element_type=jnp.float32) + b1_ref[...]
    h = jnp.maximum(h, 0.0)

    # linear_2 + ReLU
    h = jnp.dot(h.astype(jnp.bfloat16), w2_ref[...],
                preferred_element_type=jnp.float32) + b2_ref[...]
    h = jnp.maximum(h, 0.0)

    # linear_3
    h = jnp.dot(h.astype(jnp.bfloat16), w3_ref[...],
                preferred_element_type=jnp.float32) + b3_ref[...]

    # residual (re-read s_ref here so its f32 copy is not live across the matmuls)
    y = h + s_ref[...].astype(jnp.float32)

    # LayerNorm over the feature (lane) dim, biased variance (nn.LayerNorm)
    mean = jnp.mean(y, axis=-1, keepdims=True)
    yc = y - mean
    var = jnp.mean(yc * yc, axis=-1, keepdims=True)
    inv = jax.lax.rsqrt(var + eps)
    o_ref[...] = (yc * inv * gamma_ref[...] + beta_ref[...]).astype(o_ref.dtype)


def structure_module_transition(params, s, *, block_rows=512, eps=1e-5,
                                vmem_limit_bytes=None):
    """Fused forward pass.  s: [..., C] -> [..., C] (same dtype as the input)."""
    orig_shape = s.shape
    c = orig_shape[-1]
    io_dtype = s.dtype                       # keep native dtype for HBM I/O
    x = s.reshape(-1, c)
    n = x.shape[0]

    # Row tile: multiple of 8 sublanes; cap at ~n/2 so the 'parallel' grid has
    # at least 2 steps when possible (v7x has 2 TensorCores per chip).
    tm = max(8, (min(block_rows, n) // 8) * 8)
    if n > 8:
        half = ((-(-n // 2)) + 7) // 8 * 8   # ceil(n/2) rounded up to 8
        tm = min(tm, half)
    grid = (pl.cdiv(n, tm),)                 # ragged last block: no pad pass

    # Rough VMEM budget (double-buffered I/O tiles + resident weights + f32
    # intermediates) -> explicit scoped-VMEM limit (v5e default is only 16 MiB,
    # v7x physical VMEM is 64 MiB).
    if vmem_limit_bytes is None:
        c_pad = ((c + 127) // 128) * 128
        io_itemsize = jnp.dtype(io_dtype).itemsize
        est = (2 * 2 * tm * c_pad * io_itemsize   # in + out row tiles, 2-deep
               + 2 * 3 * c_pad * c_pad * 2        # bf16 weights
               + 2 * 6 * 8 * c_pad * 4            # bias / gamma / beta vectors
               + 4 * tm * c_pad * 4)              # f32 intermediates in body
        vmem_limit_bytes = int(min(max(2 * est, 16 << 20), 64 << 20))

    w1 = params["w1"].astype(jnp.bfloat16)
    w2 = params["w2"].astype(jnp.bfloat16)
    w3 = params["w3"].astype(jnp.bfloat16)
    b1 = params["b1"].reshape(1, c).astype(jnp.float32)
    b2 = params["b2"].reshape(1, c).astype(jnp.float32)
    b3 = params["b3"].reshape(1, c).astype(jnp.float32)
    gamma = params["gamma"].reshape(1, c).astype(jnp.float32)
    beta = params["beta"].reshape(1, c).astype(jnp.float32)

    const = lambda i: (0, 0)   # weights / biases resident across grid steps

    out = pl.pallas_call(
        functools.partial(_smt_kernel, eps),
        out_shape=jax.ShapeDtypeStruct((n, c), io_dtype),
        grid=grid,
        in_specs=[
            pl.BlockSpec((tm, c), lambda i: (i, 0)),   # s row tile
            pl.BlockSpec((c, c), const),               # w1
            pl.BlockSpec((1, c), const),               # b1
            pl.BlockSpec((c, c), const),               # w2
            pl.BlockSpec((1, c), const),               # b2
            pl.BlockSpec((c, c), const),               # w3
            pl.BlockSpec((1, c), const),               # b3
            pl.BlockSpec((1, c), const),               # ln gamma
            pl.BlockSpec((1, c), const),               # ln beta
        ],
        out_specs=pl.BlockSpec((tm, c), lambda i: (i, 0)),
        compiler_params=pltpu.CompilerParams(
            dimension_semantics=("parallel",),         # shard rows across TCs
            vmem_limit_bytes=vmem_limit_bytes),
    )(x, w1, b1, w2, b2, w3, b3, gamma, beta)

    return out.reshape(orig_shape)


# ----------------------------------------------------------------------------
# Pure-JAX reference (for correctness check)
# ----------------------------------------------------------------------------
def ref_forward(params, s, eps=1e-5):
    x = s.astype(jnp.float32)
    h = jax.nn.relu(x @ params["w1"] + params["b1"])
    h = jax.nn.relu(h @ params["w2"] + params["b2"])
    h = h @ params["w3"] + params["b3"]
    y = h + x
    mean = jnp.mean(y, axis=-1, keepdims=True)
    var = jnp.mean((y - mean) ** 2, axis=-1, keepdims=True)
    return (y - mean) / jnp.sqrt(var + eps) * params["gamma"] + params["beta"]


# ----------------------------------------------------------------------------
# Deterministic params (torch Linear [out,in] stored transposed as [in,out])
# ----------------------------------------------------------------------------
def init_params(key, c):
    k1, k2, k3 = jax.random.split(key, 3)
    scale = 1.0 / jnp.sqrt(jnp.float32(c))
    return {
        "w1": jax.random.normal(k1, (c, c), jnp.float32) * scale,   # 'relu' init stand-in
        "b1": jnp.zeros((c,), jnp.float32),
        "w2": jax.random.normal(k2, (c, c), jnp.float32) * scale,
        "b2": jnp.zeros((c,), jnp.float32),
        # module uses 'final' init (zeros) for linear_3; small random here so
        # the third matmul path is actually exercised by the test.
        "w3": jax.random.normal(k3, (c, c), jnp.float32) * scale * 0.1,
        "b3": jnp.zeros((c,), jnp.float32),
        "gamma": jnp.ones((c,), jnp.float32),                       # LayerNorm defaults
        "beta": jnp.zeros((c,), jnp.float32),
    }


# ----------------------------------------------------------------------------
# Example
# ----------------------------------------------------------------------------
if __name__ == "__main__":
    C = 32
    BATCH, SEQ = 2, 8

    key = jax.random.PRNGKey(0)
    k_param, k_s = jax.random.split(key)

    params = init_params(k_param, C)
    s = jax.random.normal(k_s, (BATCH, SEQ, C), jnp.float32)

    # f32 activation I/O path (grid of 2 row tiles)
    out = jax.block_until_ready(structure_module_transition(params, s))
    assert out.shape == (BATCH, SEQ, C), out.shape
    assert out.dtype == s.dtype
    assert bool(jnp.all(jnp.isfinite(out)))
    ref = ref_forward(params, s)
    max_err = float(jnp.max(jnp.abs(out.astype(jnp.float32) - ref)))
    # bf16 MXU operands with f32 accumulation -> loose tolerance
    assert max_err < 1e-1, f"f32-I/O max abs err vs reference: {max_err}"

    # bf16 activation I/O path + ragged (non-divisible) row count
    s_bf16 = s[:, :5, :].astype(jnp.bfloat16)          # n = 10 rows, tm = 8
    out_bf16 = jax.block_until_ready(structure_module_transition(params, s_bf16))
    assert out_bf16.shape == (BATCH, 5, C), out_bf16.shape
    assert out_bf16.dtype == jnp.bfloat16
    assert bool(jnp.all(jnp.isfinite(out_bf16.astype(jnp.float32))))
    ref_bf16 = ref_forward(params, s_bf16.astype(jnp.float32))
    max_err_bf16 = float(jnp.max(jnp.abs(out_bf16.astype(jnp.float32) - ref_bf16)))
    assert max_err_bf16 < 2e-1, f"bf16-I/O max abs err vs reference: {max_err_bf16}"

    print("KERNEL_OK")
</pallas_src>

<mosaic_0001>
module attributes {stable_mosaic.version = 11 : i64} {
  func.func @_smt_kernel(%arg0: i32, %arg1: memref<8x32xf32, #tpu.memory_space<vmem>>, %arg2: memref<32x32xbf16, #tpu.memory_space<vmem>>, %arg3: memref<1x32xf32, #tpu.memory_space<vmem>>, %arg4: memref<32x32xbf16, #tpu.memory_space<vmem>>, %arg5: memref<1x32xf32, #tpu.memory_space<vmem>>, %arg6: memref<32x32xbf16, #tpu.memory_space<vmem>>, %arg7: memref<1x32xf32, #tpu.memory_space<vmem>>, %arg8: memref<1x32xf32, #tpu.memory_space<vmem>>, %arg9: memref<1x32xf32, #tpu.memory_space<vmem>>, %arg10: memref<8x32xf32, #tpu.memory_space<vmem>>) attributes {dimension_semantics = [#tpu.dimension_semantics<parallel>], iteration_bounds = array<i64: 2>, scalar_prefetch = 0 : i64, scratch_operands = 0 : i64, tpu.core_type = #tpu.core_type<tc>, window_params = [{transform_indices = @transform_0, window_bounds = array<i64: 8, 32>}, {pipeline_mode = #tpu.pipeline_mode<synchronous>, transform_indices = @transform_1, window_bounds = array<i64: 32, 32>}, {pipeline_mode = #tpu.pipeline_mode<synchronous>, transform_indices = @transform_2, window_bounds = array<i64: 1, 32>}, {pipeline_mode = #tpu.pipeline_mode<synchronous>, transform_indices = @transform_3, window_bounds = array<i64: 32, 32>}, {pipeline_mode = #tpu.pipeline_mode<synchronous>, transform_indices = @transform_4, window_bounds = array<i64: 1, 32>}, {pipeline_mode = #tpu.pipeline_mode<synchronous>, transform_indices = @transform_5, window_bounds = array<i64: 32, 32>}, {pipeline_mode = #tpu.pipeline_mode<synchronous>, transform_indices = @transform_6, window_bounds = array<i64: 1, 32>}, {pipeline_mode = #tpu.pipeline_mode<synchronous>, transform_indices = @transform_7, window_bounds = array<i64: 1, 32>}, {pipeline_mode = #tpu.pipeline_mode<synchronous>, transform_indices = @transform_8, window_bounds = array<i64: 1, 32>}, {transform_indices = @transform_9, window_bounds = array<i64: 8, 32>}]} {
    %c0 = arith.constant 0 : index
    %c0_0 = arith.constant 0 : index
    %0 = vector.load %arg1[%c0, %c0_0] : memref<8x32xf32, #tpu.memory_space<vmem>>, vector<8x32xf32>
    %1 = arith.truncf %0 : vector<8x32xf32> to vector<8x32xbf16>
    %c0_1 = arith.constant 0 : index
    %c0_2 = arith.constant 0 : index
    %2 = vector.load %arg2[%c0_1, %c0_2] : memref<32x32xbf16, #tpu.memory_space<vmem>>, vector<32x32xbf16>
    %cst = arith.constant dense<0.000000e+00> : vector<8x32xf32>
    %3 = tpu.matmul %1, %2, %cst {dimension_numbers = #tpu.dot_dimension_numbers<[1], [0], [0], [1], [0, 0, 1, 1], [], []>} : vector<8x32xbf16>, vector<32x32xbf16>, vector<8x32xf32> -> vector<8x32xf32>
    %c0_3 = arith.constant 0 : index
    %c0_4 = arith.constant 0 : index
    %4 = vector.load %arg3[%c0_3, %c0_4] : memref<1x32xf32, #tpu.memory_space<vmem>>, vector<1x32xf32>
    %5 = vector.broadcast %4 : vector<1x32xf32> to vector<8x32xf32>
    %6 = arith.addf %3, %5 : vector<8x32xf32>
    %cst_5 = arith.constant 0.000000e+00 : f32
    %7 = vector.broadcast %cst_5 : f32 to vector<8x32xf32>
    %8 = arith.maximumf %6, %7 : vector<8x32xf32>
    %9 = arith.truncf %8 : vector<8x32xf32> to vector<8x32xbf16>
    %c0_6 = arith.constant 0 : index
    %c0_7 = arith.constant 0 : index
    %10 = vector.load %arg4[%c0_6, %c0_7] : memref<32x32xbf16, #tpu.memory_space<vmem>>, vector<32x32xbf16>
    %cst_8 = arith.constant dense<0.000000e+00> : vector<8x32xf32>
    %11 = tpu.matmul %9, %10, %cst_8 {dimension_numbers = #tpu.dot_dimension_numbers<[1], [0], [0], [1], [0, 0, 1, 1], [], []>} : vector<8x32xbf16>, vector<32x32xbf16>, vector<8x32xf32> -> vector<8x32xf32>
    %c0_9 = arith.constant 0 : index
    %c0_10 = arith.constant 0 : index
    %12 = vector.load %arg5[%c0_9, %c0_10] : memref<1x32xf32, #tpu.memory_space<vmem>>, vector<1x32xf32>
    %13 = vector.broadcast %12 : vector<1x32xf32> to vector<8x32xf32>
    %14 = arith.addf %11, %13 : vector<8x32xf32>
    %cst_11 = arith.constant 0.000000e+00 : f32
    %15 = vector.broadcast %cst_11 : f32 to vector<8x32xf32>
    %16 = arith.maximumf %14, %15 : vector<8x32xf32>
    %17 = arith.truncf %16 : vector<8x32xf32> to vector<8x32xbf16>
    %c0_12 = arith.constant 0 : index
    %c0_13 = arith.constant 0 : index
    %18 = vector.load %arg6[%c0_12, %c0_13] : memref<32x32xbf16, #tpu.memory_space<vmem>>, vector<32x32xbf16>
    %cst_14 = arith.constant dense<0.000000e+00> : vector<8x32xf32>
    %19 = tpu.matmul %17, %18, %cst_14 {dimension_numbers = #tpu.dot_dimension_numbers<[1], [0], [0], [1], [0, 0, 1, 1], [], []>} : vector<8x32xbf16>, vector<32x32xbf16>, vector<8x32xf32> -> vector<8x32xf32>
    %c0_15 = arith.constant 0 : index
    %c0_16 = arith.constant 0 : index
    %20 = vector.load %arg7[%c0_15, %c0_16] : memref<1x32xf32, #tpu.memory_space<vmem>>, vector<1x32xf32>
    %21 = vector.broadcast %20 : vector<1x32xf32> to vector<8x32xf32>
    %22 = arith.addf %19, %21 : vector<8x32xf32>
    %c0_17 = arith.constant 0 : index
    %c0_18 = arith.constant 0 : index
    %23 = vector.load %arg1[%c0_17, %c0_18] : memref<8x32xf32, #tpu.memory_space<vmem>>, vector<8x32xf32>
    %24 = arith.addf %22, %23 : vector<8x32xf32>
    %cst_19 = arith.constant dense<0.000000e+00> : vector<8xf32>
    %25 = vector.multi_reduction <add>, %24, %cst_19 [1] : vector<8x32xf32> to vector<8xf32>
    %26 = vector.shape_cast %25 : vector<8xf32> to vector<8x1xf32>
    %cst_20 = arith.constant 3.200000e+01 : f32
    %27 = vector.broadcast %cst_20 : f32 to vector<8x1xf32>
    %28 = arith.divf %26, %27 : vector<8x1xf32>
    %29 = vector.broadcast %28 : vector<8x1xf32> to vector<8x32xf32>
    %30 = arith.subf %24, %29 : vector<8x32xf32>
    %31 = arith.mulf %30, %30 : vector<8x32xf32>
    %cst_21 = arith.constant dense<0.000000e+00> : vector<8xf32>
    %32 = vector.multi_reduction <add>, %31, %cst_21 [1] : vector<8x32xf32> to vector<8xf32>
    %33 = vector.shape_cast %32 : vector<8xf32> to vector<8x1xf32>
    %cst_22 = arith.constant 3.200000e+01 : f32
    %34 = vector.broadcast %cst_22 : f32 to vector<8x1xf32>
    %35 = arith.divf %33, %34 : vector<8x1xf32>
    %cst_23 = arith.constant 9.99999974E-6 : f32
    %36 = vector.broadcast %cst_23 : f32 to vector<8x1xf32>
    %37 = arith.addf %35, %36 : vector<8x1xf32>
    %38 = math.rsqrt %37 : vector<8x1xf32>
    %39 = vector.broadcast %38 : vector<8x1xf32> to vector<8x32xf32>
    %40 = arith.mulf %30, %39 : vector<8x32xf32>
    %c0_24 = arith.constant 0 : index
    %c0_25 = arith.constant 0 : index
    %41 = vector.load %arg8[%c0_24, %c0_25] : memref<1x32xf32, #tpu.memory_space<vmem>>, vector<1x32xf32>
    %42 = vector.broadcast %41 : vector<1x32xf32> to vector<8x32xf32>
    %43 = arith.mulf %40, %42 : vector<8x32xf32>
    %c0_26 = arith.constant 0 : index
    %c0_27 = arith.constant 0 : index
    %44 = vector.load %arg9[%c0_26, %c0_27] : memref<1x32xf32, #tpu.memory_space<vmem>>, vector<1x32xf32>
    %45 = vector.broadcast %44 : vector<1x32xf32> to vector<8x32xf32>
    %46 = arith.addf %43, %45 : vector<8x32xf32>
    %c0_28 = arith.constant 0 : index
    %c0_29 = arith.constant 0 : index
    %47 = vector.load %arg10[%c0_28, %c0_29] : memref<8x32xf32, #tpu.memory_space<vmem>>, vector<8x32xf32>
    tpu.vector_store %arg10[%c0_28, %c0_29], %46 {strides = array<i32>} : memref<8x32xf32, #tpu.memory_space<vmem>>, vector<8x32xf32>,
    return
  }
  func.func @transform_0(%arg0: i32) -> (i32, i32) {
    %c0_i32 = arith.constant 0 : i32
    %c0_i32_0 = arith.constant 0 : i32
    return %arg0, %c0_i32 : i32, i32
  }
  func.func @transform_1(%arg0: i32) -> (i32, i32) {
    %c0_i32 = arith.constant 0 : i32
    %c0_i32_0 = arith.constant 0 : i32
    %c0_i32_1 = arith.constant 0 : i32
    return %c0_i32, %c0_i32_0 : i32, i32
  }
  func.func @transform_2(%arg0: i32) -> (i32, i32) {
    %c0_i32 = arith.constant 0 : i32
    %c0_i32_0 = arith.constant 0 : i32
    %c0_i32_1 = arith.constant 0 : i32
    return %c0_i32, %c0_i32_0 : i32, i32
  }
  func.func @transform_3(%arg0: i32) -> (i32, i32) {
    %c0_i32 = arith.constant 0 : i32
    %c0_i32_0 = arith.constant 0 : i32
    %c0_i32_1 = arith.constant 0 : i32
    return %c0_i32, %c0_i32_0 : i32, i32
  }
  func.func @transform_4(%arg0: i32) -> (i32, i32) {
    %c0_i32 = arith.constant 0 : i32
    %c0_i32_0 = arith.constant 0 : i32
    %c0_i32_1 = arith.constant 0 : i32
    return %c0_i32, %c0_i32_0 : i32, i32
  }
  func.func @transform_5(%arg0: i32) -> (i32, i32) {
    %c0_i32 = arith.constant 0 : i32
    %c0_i32_0 = arith.constant 0 : i32
    %c0_i32_1 = arith.constant 0 : i32
    return %c0_i32, %c0_i32_0 : i32, i32
  }
  func.func @transform_6(%arg0: i32) -> (i32, i32) {
    %c0_i32 = arith.constant 0 : i32
    %c0_i32_0 = arith.constant 0 : i32
    %c0_i32_1 = arith.constant 0 : i32
    return %c0_i32, %c0_i32_0 : i32, i32
  }
  func.func @transform_7(%arg0: i32) -> (i32, i32) {
    %c0_i32 = arith.constant 0 : i32
    %c0_i32_0 = arith.constant 0 : i32
    %c0_i32_1 = arith.constant 0 : i32
    return %c0_i32, %c0_i32_0 : i32, i32
  }
  func.func @transform_8(%arg0: i32) -> (i32, i32) {
    %c0_i32 = arith.constant 0 : i32
    %c0_i32_0 = arith.constant 0 : i32
    %c0_i32_1 = arith.constant 0 : i32
    return %c0_i32, %c0_i32_0 : i32, i32
  }
  func.func @transform_9(%arg0: i32) -> (i32, i32) {
    %c0_i32 = arith.constant 0 : i32
    %c0_i32_0 = arith.constant 0 : i32
    return %arg0, %c0_i32 : i32, i32
  }
}

</mosaic_0001>

<bundles_post_ra>
// kernel: tpu_custom_call.1
= control target key start
LH: loop header
LB: loop body
LE: loop exit
PB: predicated region body
PF: predicated region fallthrough
CT: control target
= control target key end

     0   :  { %s1338_s0 = inlined_call_operand.hbm [shape: f32[16,32], index: 0, kind: input, shape index: {}]   ;;  %s1339_s1 = inlined_call_operand.hbm [shape: bf16[32,32], index: 1, kind: input, shape index: {}]   ;;  %s1340_s2 = inlined_call_operand.vmem [shape: f32[1,32], index: 2, kind: input, shape index: {}]   ;;  %s1341_s3 = inlined_call_operand.hbm [shape: bf16[32,32], index: 3, kind: input, shape index: {}]   ;;  %s1342_s4 = inlined_call_operand.vmem [shape: f32[1,32], index: 4, kind: input, shape index: {}]   ;;  %s1343_s5 = inlined_call_operand.hbm [shape: bf16[32,32], index: 5, kind: input, shape index: {}]   ;;  %s1344_s6 = inlined_call_operand.vmem [shape: f32[1,32], index: 6, kind: input, shape index: {}]   ;;  %s1345_s7 = inlined_call_operand.vmem [shape: f32[1,32], index: 7, kind: input, shape index: {}]   ;;  %s1346_s8 = inlined_call_operand.vmem [shape: f32[1,32], index: 8, kind: input, shape index: {}]   ;;  %s1347_s9 = inlined_call_operand.hbm [shape: f32[16,32], index: 9, kind: output, shape index: {}]  }
   0x1   :  { %1352 = sst [smem:[#allocation16_spill]] %s1339_s1 }
   0x2   :  { %1353 = sst [smem:[#allocation17_spill]] %s1341_s3 }
   0x3   :  { %1354 = sst [smem:[#allocation18_spill]] %s1343_s5 }
   0x4   :  { %14 = vsyncpa [#allocation3], 0 }
   0x5   :  { %16 = vsyncpa [#allocation3 + $0x1], 0 }
   0x6   :  { %17 = vsyncpa [#allocation6], 0 }
   0x7   :  { %18 = vsyncpa [#allocation9], 0 }
   0x8   :  { %19 = vsyncpa [#allocation4], 0 }
   0x9   :  { %21 = vsyncpa [#allocation4 + $0x1], 0  ;;  %s1136_s30 = smov 0   ;;  %s1138_s10 = smov 0  }
   0xa   :  { %s1140_s11 = smov 0   ;;  %s1142_s12 = smov 0  }
   0xb LB: > { %s1157_s13 = sadd.s32 4294967295, %s1075_s12   ;;  %s743_s14 = sadd.s32 4294967294, %s1075_s12   ;;  %s1075_s12 = sphi %s1142_s12, %s1379_s12   ;;  %s1071_s11 = sphi %s1140_s11, %s1378_s11   ;;  %s1067_s10 = sphi %s1138_s10, %s1377_s10   ;;  %s1063_s30 = sphi %s1136_s30, %s1376_s30  }
   0xc   : > { %p47_p0 = scmp.ne.s32.totalorder %s1067_s10, %s1063_s30  ;;  %p1348_p1 = scmp.eq.s32.totalorder %s1157_s13, 0 }
   0xd   : > { %p245_p3 = scmp.eq.s32.totalorder %s743_s14, 1  ;;  %p744_p5 = scmp.ge.s32.totalorder %s1075_s12, 1 }
   0xe   : > { %p1166_p4 = por %p1348_p1, %p47_p0  ;;  %p252_p7 = scmp.lt.s32.totalorder %s1075_s12, 3 }
   0xf   : > { %p1171_p6 = por %p245_p3, %p47_p0  ;;  %s1077_s18 = smov [#allocation5]  }
  0x10   : > { %s1355_s15 = scalar_select %p1166_p4, 1, 0 }
  0x11   : > { %s1356_s16 = scalar_select %p1171_p6, 1, 0 }
  0x12   : > { %p1176_p8 = pnand %p744_p5, %p252_p7  ;;  %s264_s19 = sshll.u32 %s1077_s18, 4  ;;  %s265_s19 = int_to_ptr.vmem [resolvable:$true] %s264_s19 }
  0x13   : > { %s1078_s21 = smov [#allocation7]   ;;  %s1079_s23 = smov [#allocation8]  }
  0x14   : > { %s1357_s17 = scalar_select %p1176_p8, 1, 0 }
  0x15   : > { %p824_p9 = pneg %p1176_p8  ;;  %s280_s22 = sshll.u32 %s1078_s21, 4  ;;  %s281_s22 = int_to_ptr.vmem [resolvable:$true] %s280_s22 }
  0x16   : > { %s296_s24 = sshll.u32 %s1079_s23, 4  ;;  %s908_s25 = scalar_lea.vmem %s265_s19, 256  ;;  %s297_s24 = int_to_ptr.vmem [resolvable:$true] %s296_s24 }
  0x17   : > { %p1185_p11 = pnand %p824_p9, %p1348_p1  ;;  %p909_p13 = scmp.ne.s32.totalorder %s265_s19, %s908_s25 }
  0x18   : > { %p916_p5 = scmp.lt.s32.totalorder %s265_s19, %s265_s19  ;;  %p917_p7 = scmp.lt.s32.totalorder %s908_s25, %s908_s25 }
  0x19   : > { %p899_p12 = pneg %p1185_p11 }
  0x1a   : > { %p918_p9 = por %p917_p7, %p916_p5 }
  0x1b   : > { %p911_p0 = pnand %p909_p13, %p899_p12 }
  0x1d   : > { %p912_p3 = pneg %p911_p0 }
  0x1f   : > { %p919_p10 = pnand %p918_p9, %p912_p3 }
  0x21   : > { %922 = shalt.err (!%p919_p10)
}
  0x22   : > { %s1080_s26 = smov 64   ;;  %s1081_s27 = smov 4  }
  0x23   : > { %s1359_s1 = sld [smem:[#allocation16_spill]]  ;;  %s934_s14 = scalar_lea.vmem %s281_s22, 256 }
  0x24   : > { %p935_p1 = scmp.ne.s32.totalorder %s281_s22, %s934_s14  ;;  %p942_p2 = scmp.lt.s32.totalorder %s281_s22, %s281_s22 }
  0x25   : > { %p943_p6 = scmp.lt.s32.totalorder %s934_s14, %s934_s14 }
  0x26   : > { %p937_p13 = pnand %p935_p1, %p899_p12 }
  0x27   : > { %p944_p5 = por %p943_p6, %p942_p2 }
  0x28   : > { %p938_p0 = pneg %p937_p13 }
  0x29   : > { %827 = dma.hbm_to_vmem [thread:$0]  (!%p1185_p11), %s1359_s1, 256, %s265_s19, [#allocation6], %s1080_s26, %s1080_s26, %s1081_s27  }
  0x2a   : > { %p945_p3 = pnand %p944_p5, %p938_p0 }
  0x2c   : > { %948 = shalt.err (!%p945_p3)
}
  0x2d   : > { %s1360_s3 = sld [smem:[#allocation17_spill]]  ;;  %s960_s19 = scalar_lea.vmem %s297_s24, 256 }
  0x2e   : > { %p961_p10 = scmp.ne.s32.totalorder %s297_s24, %s960_s19  ;;  %p968_p9 = scmp.lt.s32.totalorder %s297_s24, %s297_s24 }
  0x2f   : > { %p969_p13 = scmp.lt.s32.totalorder %s960_s19, %s960_s19 }
  0x30   : > { %p963_p7 = pnand %p961_p10, %p899_p12 }
  0x31   : > { %p970_p4 = por %p969_p13, %p968_p9 }
  0x32   : > { %p964_p1 = pneg %p963_p7 }
  0x33   : > { %830 = dma.hbm_to_vmem [thread:$0]  (!%p1185_p11), %s1360_s3, 256, %s281_s22, [#allocation6], %s1080_s26, %s1080_s26, %s1081_s27  }
  0x34   : > { %p971_p2 = pnand %p970_p4, %p964_p1 }
  0x36   : > { %974 = shalt.err (!%p971_p2)
}
  0x37   : > { %s1361_s5 = sld [smem:[#allocation18_spill]]  ;;  %s1216_s22 = sadd.s32 1, %s1075_s12  }
  0x38   : > { %s31_s28 = ssub.s32 %s1075_s12, %s1216_s22  ;;  %s34_s20 = sadd.s32 1, %s1071_s11 }
  0x39   : > { %p32_p4 = scmp.eq.s32.totalorder %s31_s28, 0  ;;  %p41_p6 = scmp.ne.s32.totalorder %s1071_s11, %s1067_s10 }
  0x3a   : > { %p42_p12 = scmp.eq.s32.totalorder %s1075_s12, 0  ;;  %p845_p0 = scmp.lt.s32.totalorder %s1075_s12, 2 }
  0x3b   : > { %s1226_s29 = scalar_select %p32_p4, %s1071_s11, %s34_s20  }
  0x3c   : > { %p43_p5 = por %p42_p12, %p41_p6  ;;  %p1363_p3 = scmp.eq.s32.totalorder %s1157_s13, 1 }
  0x3d   : > { %833 = dma.hbm_to_vmem [thread:$0]  (!%p1185_p11), %s1361_s5, 256, %s297_s24, [#allocation9], %s1080_s26, %s1080_s26, %s1081_s27  }
  0x3e   : > { %1362 = sst [smem:[#allocation15_spill]] %s1226_s29  ;;  %p1230_p10 = por %p1363_p3, %p41_p6 }
  0x3f   : > { %s319_s18 = sand.u32 1, %s1071_s11   ;;  %s750_s21 = sshll.u32 %s1075_s12, 7 }
  0x40   : > { %s1364_s14 = scalar_select %p1230_p10, 1, 0 }
  0x41   : > { %s749_s24 = sshll.u32 %s319_s18, 3  ;;  %s1239_s19 = scalar_lea.hbm %s1338_s0, %s750_s21 }
  0x42   : > { %s323_s23 = scalar_lea.vmem [#allocation2], %s749_s24  ;;  %p1241_p11 = pnand %p845_p0, %p43_p5 }
  0x43   : > { %s330_s25 = sshll.u32 %s323_s23, 4  ;;  %s320_s20 = scalar_lea.sflag [#allocation3], %s319_s18  ;;  %s331_s25 = int_to_ptr.vmem [resolvable:$true] %s330_s25 }
  0x44   : > { %s975_s1 = scalar_lea.hbm %s1239_s19, 128  ;;  %p977_p1 = pneg %p1241_p11 }
  0x45   : > { %p976_p7 = scmp.ne.s32.totalorder %s1239_s19, %s975_s1  ;;  %s980_s27 = scalar_lea.hbm %s1338_s0, 256 }
  0x46   : > { %p981_p2 = scmp.lt.s32.totalorder %s1239_s19, %s1338_s0  ;;  %p982_p4 = scmp.lt.s32.totalorder %s980_s27, %s975_s1 }
  0x47   : > { %p978_p9 = pnand %p977_p1, %p976_p7 }
  0x48   : > { %p983_p6 = por %p982_p4, %p981_p2 }
  0x49   : > { %p979_p13 = pneg %p978_p9 }
  0x4b   : > { %p984_p12 = pnand %p983_p6, %p979_p13 }
  0x4d   : > { %987 = shalt.err (!%p984_p12)
}
  0x4e   : > { %s988_s23 = scalar_lea.vmem %s331_s25, 128  ;;  %s1082_s18 = smov [#allocation2]  }
  0x4f   : > { %p989_p0 = scmp.ne.s32.totalorder %s331_s25, %s988_s23  ;;  %s993_s5 = sshll.u32 %s1082_s18, 4  ;;  %s994_s5 = int_to_ptr.vmem [resolvable:$false] %s993_s5 }
  0x50   : > { %s995_s29 = scalar_lea.vmem %s994_s5, 256  ;;  %p996_p7 = scmp.lt.s32.totalorder %s331_s25, %s994_s5 }
  0x51   : > { %p991_p5 = pnand %p989_p0, %p977_p1  ;;  %p997_p9 = scmp.lt.s32.totalorder %s995_s29, %s988_s23 }
  0x53   : > { %p992_p3 = pneg %p991_p5  ;;  %p998_p10 = por %p997_p9, %p996_p7 }
  0x55   : > { %p999_p8 = pnand %p998_p10, %p992_p3 }
  0x57   : > { %1002 = shalt.err (!%p999_p8)
}
  0x58   : > { %837 = dma.hbm_to_vmem [thread:$0]  (!%p1241_p11), %s1239_s19, 128, %s331_s25, %s320_s20  }
  0x59   : > { %p1366_p13 = scmp.ne.s32.totalorder %s1357_s17, 0 }
  0x5a   : > { %s1262_s1 = sand.u32 (!%p1366_p13), 1, %s1067_s10   ;;  %p1367_p10 = scmp.ne.s32.totalorder (!%p1366_p13), %s1355_s15, 0 }
  0x5b   : > { %339 = sbr.rel (%p1366_p13) target bundleno = 1029 (0x405), region = 56  ;;  %s752_s3 = sshll.u32 (!%p1366_p13), %s1262_s1, 3 }
  0x5c   : > { %s342_s5 = scalar_lea.sflag (!%p1366_p13), [#allocation3], %s1262_s1  ;;  %s345_s29 = scalar_lea.vmem (!%p1366_p13), [#allocation2], %s752_s3 }
  0x60   : > { %1046 = dma.done.wait (%p1367_p10), %s342_s5, 128  }
  0x61   : > { %1048 = vsyncadd (%p1367_p10), %s342_s5, 4294967168  ;;  %p1368_p8 = scmp.eq.s32.totalorder %s1157_s13, 0 }
  0x63   : > { %1050 = dma.done.wait (%p1368_p8), [#allocation6], 512   ;;  %p1369_p11 = pmov %p1368_p8 }
  0x64   : > { %p1370_p1 = pmov %p1368_p8 }
  0x65   : > { %1052 = vsyncadd (%p1369_p11), [#allocation6], 4294966784 }
  0x66   : > { %1054 = dma.done.wait (%p1370_p1), [#allocation9], 256   ;;  %p1371_p2 = pmov %p1370_p1 }
  0x67   : > { %v1083_v0 = vmov 0.0   ;;  %vm1084_vm0 = vmmov 0   ;;  %v889_v1 = vld [vmem:[#allocation5 + $0x8] sm:$0xff]   ;;  %v890_v2 = vld [vmem:[#allocation5] sm:$0xff]   ;;  %v393_v3 = vld [vmem:[%s345_s29] sm:$0xff]  ;;  %vm418_vm1 = vcmask 261120  }
  0x68   : > { %1056 = vsyncadd (%p1371_p2), [#allocation9], 4294967040  ;;  %784 = vmatprep.subr.bf16.mxu0 %v1083_v0  ;;  %788 = vmatprep.mubr.msk.bf16.mxu0 %vm1084_vm0, %v1083_v0  ;;  %v394_v4 = vpack.c.bf16 %v393_v3, %v393_v3  ;;  %v891_v5 = vld [vmem:[#allocation7 + $0x8] sm:$0xff]   ;;  %v892_v6 = vld [vmem:[#allocation7] sm:$0xff]   ;;  %s772_s23 = sshll.u32 %s1157_s13, 7  ;;  %s391_s18 = scalar_lea.vmem [#allocation10], %s752_s3 }
  0x69   : > { %792 = vmatprep.subr.bf16.mxu1 %v1083_v0  ;;  %796 = vmatprep.mubr.msk.bf16.mxu1 %vm1084_vm0, %v1083_v0  ;;  %v893_v7 = vld [vmem:[#allocation8 + $0x8] sm:$0xff]   ;;  %v757_v8 = vld [vmem:[%s1340_s2] ss:$0 sm:$0xff]  ;;  %v894_v16 = vld [vmem:[#allocation8] sm:$0xff]   ;;  %s644_s5 = sshll.u32 %s391_s18, 4  ;;  %s642_s17 = scalar_lea.hbm %s1347_s9, %s772_s23  ;;  %s645_s5 = int_to_ptr.vmem [resolvable:$true] %s644_s5 }
  0x6a   : > { %785 = vmatpush3.bf16.msra.mxu0 %v889_v1  ;;  %793 = vmatpush3.bf16.msra.mxu1 %v891_v5  ;;  %v761_v17 = vld [vmem:[%s1342_s4] ss:$0 sm:$0xff]  ;;  %s631_s19 = scalar_lea.sflag [#allocation4], %s1262_s1  ;;  %s1003_s25 = scalar_lea.vmem %s645_s5, 128 }
  0x6b   : > { %786 = vmatprep.subr.bf16.mxu0 %v1083_v0  ;;  %794 = vmatprep.subr.bf16.mxu1 %v1083_v0  ;;  %v765_v25 = vld [vmem:[%s1344_s6] ss:$0 sm:$0xff]  ;;  %p1004_p4 = scmp.ne.s32.totalorder %s645_s5, %s1003_s25  ;;  %p1372_p6 = scmp.ne.s32.totalorder %s1364_s14, 0 }
  0x6c   : > { %v769_v42 = vld [vmem:[%s1345_s7] ss:$0 sm:$0xff]  ;;  %s1085_s28 = smov [#allocation10]  }
  0x6d   : > { %v770_v44 = vld [vmem:[%s1346_s8] ss:$0 sm:$0xff]  ;;  %p1005_p12 = pnand %p1004_p4, %p1372_p6  ;;  %s1007_s13 = sshll.u32 %s1085_s28, 4  ;;  %s1008_s13 = int_to_ptr.vmem [resolvable:$false] %s1007_s13 }
  0x6e   : > { %787 = vmatpush3.bf16.msra.mxu0 %v890_v2  ;;  %795 = vmatpush3.bf16.msra.mxu1 %v892_v6  ;;  %s1009_s3 = scalar_lea.vmem %s1008_s13, 256  ;;  %p1010_p5 = scmp.lt.s32.totalorder %s645_s5, %s1008_s13 }
  0x6f   : > { %800 = vmatprep.subr.bf16.mxu0 %v1083_v0  ;;  %p1006_p0 = pneg %p1005_p12  ;;  %p1011_p3 = scmp.lt.s32.totalorder %s1009_s3, %s1003_s25 }
  0x71   : > { %789 = vmatmul.mubr.msk.bf16.vlgmr.msra.gmra.mxu0 %vm418_vm1, %v394_v4  ;;  %p1012_p7 = por %p1011_p3, %p1010_p5 }
  0x72   : > { %804 = vmatprep.mubr.msk.bf16.mxu0 %vm1084_vm0, %v1083_v0  ;;  %801 = vmatpush3.bf16.msra.mxu0 %v893_v7 }
  0x73   : > { %802 = vmatprep.subr.bf16.mxu0 %v1083_v0  ;;  %p1013_p9 = pnand %p1012_p7, %p1006_p0 }
  0x76   : > { %803 = vmatpush3.bf16.msra.mxu0 %v894_v16 }
 0x131   : > { %v456_v9 = vpop.f32.mrf.mxu0 }
 0x132   : > { %v457_v10 = vadd.f32 %v757_v8, %v456_v9 }
 0x133   : > { %v790_v11 = vpop.f32.mrf.mxu0 }
 0x134   : > { %v462_v12 = vmax.f32 %v457_v10, 0.0 }
 0x135   : > { %v459_v13 = vpop.f32.mrf.mxu0 }
 0x136   : > { %v463_v14 = vpack.c.bf16 %v462_v12, %v462_v12 }
 0x137   : > { %v791_v15 = vpop.f32.mrf.mxu0 }
 0x138   : > { %797 = vmatmul.mubr.msk.bf16.vlgmr.msra.gmra.mxu1 %vm418_vm1, %v463_v14 }
 0x1f8   : > { %v524_v18 = vpop.f32.mrf.mxu1 }
 0x1f9   : > { %v525_v19 = vadd.f32 %v761_v17, %v524_v18 }
 0x1fa   : > { %v798_v20 = vpop.f32.mrf.mxu1 }
 0x1fb   : > { %v530_v21 = vmax.f32 %v525_v19, 0.0 }
 0x1fc   : > { %v527_v22 = vpop.f32.mrf.mxu1 }
 0x1fd   : > { %v531_v23 = vpack.c.bf16 %v530_v21, %v530_v21 }
 0x1fe   : > { %v799_v24 = vpop.f32.mrf.mxu1 }
 0x1ff   : > { %805 = vmatmul.mubr.msk.bf16.vlgmr.msra.gmra.mxu0 %vm418_vm1, %v531_v23 }
 0x2bf   : > { %v592_v26 = vpop.f32.mrf.mxu0 }
 0x2c0   : > { %v593_v27 = vadd.f32 %v765_v25, %v592_v26 }
 0x2c1   : > { %v806_v28 = vpop.f32.mrf.mxu0 }
 0x2c2   : > { %v598_v29 = vadd.f32 %v593_v27, %v393_v3 }
 0x2c3   : > { %v595_v30 = vpop.f32.mrf.mxu0 }
 0x2c4   : > { %v599_v31 = vsel %vm418_vm1, %v598_v29, 0.0 }
 0x2c5   : > { %600 = vadd.xlane.f32.xlu0 %v599_v31  ;;  %v807_v32 = vpop.f32.mrf.mxu0 }
 0x34e   : > { %v601_v33 = vpop.xlane.xlu0 %600 }
 0x34f   : > { %v603_v34 = vmul.f32 0.03125, %v601_v33 }
 0x351   : > { %v604_v35 = vsub.f32 %v598_v29, %v603_v34 }
 0x353   : > { %v605_v36 = vmul.f32 %v604_v35, %v604_v35 }
 0x355   : > { %v606_v37 = vsel %vm418_vm1, %v605_v36, 0.0 }
 0x356   : > { %607 = vadd.xlane.f32.xlu0 %v606_v37 }
 0x3df   : > { %v608_v38 = vpop.xlane.xlu0 %607 }
 0x3e0   : > { %v609_v39 = vmul.f32 0.03125, %v608_v38 }
 0x3e2   : > { %v610_v40 = vadd.f32 1e-05, %v609_v39 }
 0x3e4   : > { %895 = vrsqrt.f32 %v610_v40 }
 0x3f1   : > { %v896_v41 = vpop.eup %895 }
 0x3f2   : > { %v612_v43 = vmul.f32 %v896_v41, %v604_v35 }
 0x3f4   : > { %v620_v45 = vmul.f32 %v769_v42, %v612_v43 }
 0x3f6   : > { %v628_v46 = vadd.f32 %v770_v44, %v620_v45 }
 0x3f8   : > { %629 = vst.msk [vmem:[%s391_s18] sm:$0xff] %vm418_vm1, %v628_v46 }
 0x3f9   : > { %1016 = shalt.err (!%p1013_p9)
}
 0x3fa   : > { %s1017_s20 = scalar_lea.hbm %s642_s17, 128  ;;  %s1021_s26 = scalar_lea.hbm %s1347_s9, 256 }
 0x3fb   : > { %p1018_p13 = scmp.ne.s32.totalorder %s642_s17, %s1017_s20  ;;  %p1022_p11 = scmp.lt.s32.totalorder %s642_s17, %s1347_s9 }
 0x3fc   : > { %p1023_p1 = scmp.lt.s32.totalorder %s1021_s26, %s1017_s20 }
 0x3fd   : > { %p1019_p10 = pnand %p1018_p13, %p1372_p6 }
 0x3fe   : > { %p1024_p2 = por %p1023_p1, %p1022_p11 }
 0x3ff   : > { %p1020_p8 = pneg %p1019_p10 }
 0x401   : > { %p1025_p4 = pnand %p1024_p2, %p1020_p8 }
 0x403   : > { %1028 = shalt.err (!%p1025_p4)
}
 0x404   : > { %822 = dma.vmem_to_hbm [thread:$0]  (%p1372_p6), %s645_s5, 128, %s642_s17, %s631_s19  }
 0x405 PF: > { %s656_s23 = sand.u32 1, %s1063_s30   ;;  %p1373_p12 = scmp.ne.s32.totalorder %s1356_s16, 0 }
 0x406   : > { %p1374_p0 = scmp.ge.s32.totalorder %s1075_s12, 2  ;;  %s657_s18 = scalar_lea.sflag [#allocation4], %s656_s23 }
 0x408   : > { %p839_p5 = pnand %p1374_p0, %p1373_p12 }
 0x40a   : > { %p840_p3 = pneg %p839_p5 }
 0x40c   : > { %1058 = dma.done.wait (%p840_p3), %s657_s18, 128  }
 0x40d   : > { %1060 = vsyncadd (%p840_p3), %s657_s18, 4294967168  ;;  %s1375_s29 = sld [smem:[#allocation15_spill]]  ;;  %p24_p7 = scmp.ge.s32.totalorder %s1216_s22, 4  }
 0x40e   : > { %s1376_s30 = smov %s1067_s10  ;;  %s1377_s10 = smov %s1071_s11 }
 0x40f   : > { %s1379_s12 = smov %s1216_s22  ;;  %26 = sbr.rel (!%p24_p7) target bundleno = 11 (0xb), region = 113 }
 0x413   : > { %s1378_s11 = smov %s1375_s29 }
 0x414   :  { %662 = vsyncpa [#allocation3], 1 }
 0x415   :  { %664 = vsyncpa [#allocation3 + $0x1], 1 }
 0x416   :  { %665 = vsyncpa [#allocation6], 1 }
 0x417   :  { %666 = vsyncpa [#allocation9], 1 }
 0x418   :  { %667 = vsyncpa [#allocation4], 1 }
 0x419   :  { %669 = vsyncpa [#allocation4 + $0x1], 1 }

</bundles_post_ra>
